<compile_context>
chip_gen: v7x
topology: tpu7x:2x2x1
jax: 0.10.0
libtpu: 0.0.40
codegen_flags: <defaults>
</compile_context>

<pallas_src>
import functools

import jax
import jax.numpy as jnp
from jax.experimental import pallas as pl
from jax.experimental.pallas import tpu as pltpu


def _round_up(x, m):
    return ((x + m - 1) // m) * m


def _vmem_capacity_bytes():
    try:
        cap = getattr(pltpu.get_tpu_info(), "vmem_capacity_bytes", None)
        if cap:
            return int(cap)
    except Exception:
        pass
    return 64 << 20  # conservative default: v7x per-TensorCore VMEM


# ------------------------------- kernels -------------------------------------

def _fh_kernel_resident(x_ref, w_ref, b_ref, o_ref, *, compute_dtype):
    # Weight fully VMEM-resident, single K step.
    # x_ref: (TM, nf)  w_ref: (nf, T_pad)  b_ref: (1, T_pad)  o_ref: (TM, T_pad)
    x = x_ref[...]
    if compute_dtype is not None:
        x = x.astype(compute_dtype)              # VPU cast on the VMEM tile
    acc = jnp.dot(x, w_ref[...], preferred_element_type=jnp.float32)
    o_ref[...] = (acc + b_ref[...]).astype(o_ref.dtype)


def _fh_kernel_ktiled_f32(x_ref, w_ref, b_ref, o_ref, *, compute_dtype):
    # K-tiled path, float32 output: accumulate directly into the VMEM-resident
    # output tile (no scratch accumulator).
    k = pl.program_id(1)
    x = x_ref[...]
    if compute_dtype is not None:
        x = x.astype(compute_dtype)
    part = jnp.dot(x, w_ref[...], preferred_element_type=jnp.float32)

    @pl.when(k == 0)
    def _():
        o_ref[...] = part                        # first step writes (no zero-init pass)

    @pl.when(k > 0)
    def _():
        o_ref[...] += part

    @pl.when(k == pl.num_programs(1) - 1)
    def _():
        o_ref[...] += b_ref[...]


def _fh_kernel_ktiled_acc(x_ref, w_ref, b_ref, o_ref, acc_ref, *, compute_dtype):
    # K-tiled path, non-f32 output dtype: f32 scratch accumulator.
    k = pl.program_id(1)
    x = x_ref[...]
    if compute_dtype is not None:
        x = x.astype(compute_dtype)
    part = jnp.dot(x, w_ref[...], preferred_element_type=jnp.float32)

    @pl.when(k == 0)
    def _():
        acc_ref[...] = part

    @pl.when(k > 0)
    def _():
        acc_ref[...] += part

    @pl.when(k == pl.num_programs(1) - 1)
    def _():
        o_ref[...] = (acc_ref[...] + b_ref[...]).astype(o_ref.dtype)


# ------------------------------- wrapper --------------------------------------

@functools.partial(
    jax.jit,
    static_argnames=("tm", "tk", "compute_dtype", "out_dtype", "weight_resident"))
def flatten_head(x, weight, bias, *, tm=256, tk=512, compute_dtype=None,
                 out_dtype=None, weight_resident=None):
    """FlattenHead forward (inference; dropout == identity).

    x:      [B, n_vars, d_model, patch_num]
    weight: [target_window, nf]   (PyTorch nn.Linear layout, nf = d_model*patch_num)
    bias:   [target_window]
    weight_resident: None = auto, True / False = force / forbid the
        VMEM-resident-weight single-K-step fast path.
    returns [B, n_vars, target_window]
    """
    B, V, D, P = x.shape
    nf = D * P
    T = weight.shape[0]
    assert weight.shape == (T, nf), (weight.shape, (T, nf))
    assert bias.shape == (T,)

    out_dtype = jnp.dtype(out_dtype or x.dtype)
    use_acc = out_dtype != jnp.dtype(jnp.float32)

    M = B * V
    # nn.Flatten(start_dim=-2) (row-major, patch_num fastest) + collapse the
    # leading (B, n_vars) dims into one row axis.  No pad, no cast: x is read
    # from HBM exactly once, in its original dtype.
    x_flat = x.reshape(M, nf)

    # Weight: one-time layout change to [nf, T] (standard MXU orientation, no
    # per-step transpose) + optional bf16 cast (halves the dominant HBM bytes).
    wt = weight.T
    if compute_dtype is not None:
        wt = wt.astype(compute_dtype)
    T_pad = _round_up(T, 128)                    # lane-dense output stores
    if T_pad != T:
        wt = jnp.pad(wt, ((0, 0), (0, T_pad - T)))
    b2 = jnp.pad(bias.astype(jnp.float32), (0, T_pad - T)).reshape(1, T_pad)

    bx = jnp.dtype(x_flat.dtype).itemsize
    bw = jnp.dtype(wt.dtype).itemsize
    bo = out_dtype.itemsize

    cap = _vmem_capacity_bytes()
    budget = int(cap * 0.75)                     # headroom for compiler scratch
    headroom = 2 << 20

    # Row-tile candidates (multiples of 8, or the full M extent -> always legal).
    cands = []
    if M <= tm:
        cands.append(M)
    for t in (tm, 512, 256, 128, 64, 32, 16, 8):
        t = (min(t, tm) // 8) * 8
        if 8 <= t < M and t not in cands:
            cands.append(t)
    if not cands:
        cands = [M if M < 8 else 8]
    cands = sorted(set(cands), reverse=True)

    # ---- fast path: weight fully VMEM-resident, single K step ----------------
    def _fits_fast(t_m):
        return (2 * nf * T_pad * bw + 2 * t_m * nf * bx + 2 * t_m * T_pad * bo
                + 2 * T_pad * 4 + headroom) <= budget

    TM_fast = None
    if weight_resident is not False:
        TM_fast = next((t for t in cands if _fits_fast(t)), None)
        if weight_resident is True and TM_fast is None:
            TM_fast = cands[-1]                  # forced residency: smallest row tile

    if TM_fast is not None:
        TM = TM_fast
        grid = (pl.cdiv(M, TM),)
        kernel = functools.partial(_fh_kernel_resident, compute_dtype=compute_dtype)
        in_specs = [
            pl.BlockSpec((TM, nf), lambda i: (i, 0)),       # x streams; ragged edge masked
            pl.BlockSpec((nf, T_pad), lambda i: (0, 0)),    # weight fetched from HBM once
            pl.BlockSpec((1, T_pad), lambda i: (0, 0)),     # bias resident
        ]
        out_specs = pl.BlockSpec((TM, T_pad), lambda i: (i, 0))
        scratch_shapes = []
        dim_sem = ("parallel",)
        est = (2 * nf * T_pad * bw + 2 * TM * nf * bx + 2 * TM * T_pad * bo
               + 2 * T_pad * 4)
    else:
        # ---- K-tiled path -----------------------------------------------------
        tk_r = max(128, (tk // 128) * 128)
        # Prefer a TK that divides nf so the contraction dim needs no padding.
        div_cands = [c * 128 for c in range(tk_r // 128, 0, -1)
                     if nf % (c * 128) == 0]
        tk_cands = div_cands if div_cands else [c * 128
                                                for c in range(tk_r // 128, 0, -1)]

        def _fits_kt(t_m, t_k):
            acc_b = t_m * T_pad * 4 if use_acc else 0
            return (2 * t_m * t_k * bx + 2 * t_k * T_pad * bw
                    + 2 * t_m * T_pad * bo + acc_b + 2 * T_pad * 4
                    + headroom) <= budget

        # Maximize the row tile first: every extra row tile re-streams the whole
        # weight from HBM, which is the roofline for this skinny-M GEMM.
        if M <= 1024:
            km_cands = [M] + [t for t in (512, 256, 128, 64, 32, 16, 8) if t < M]
        else:
            km_cands = [t for t in (1024, 512, 256, 128, 64, 32, 16, 8) if t <= M]

        TM, TK = None, None
        for t_m in km_cands:
            t_k = next((c for c in tk_cands if _fits_kt(t_m, c)), None)
            if t_k is not None:
                TM, TK = t_m, t_k
                break
        if TM is None:
            TM, TK = (M if M < 8 else 8), 128    # minimal legal tiles

        nf_pad = nf
        if nf % TK != 0:
            # Fallback only: nf has no 128-multiple divisor <= tk.  Zero-padding
            # the contraction dim is correctness-preserving (padded cols are 0).
            nf_pad = _round_up(nf, TK)
            x_flat = jnp.pad(x_flat, ((0, 0), (0, nf_pad - nf)))
            wt = jnp.pad(wt, ((0, nf_pad - nf), (0, 0)))

        grid = (pl.cdiv(M, TM), nf_pad // TK)
        if use_acc:
            kernel = functools.partial(_fh_kernel_ktiled_acc,
                                       compute_dtype=compute_dtype)
            scratch_shapes = [pltpu.VMEM((TM, T_pad), jnp.float32)]
        else:
            kernel = functools.partial(_fh_kernel_ktiled_f32,
                                       compute_dtype=compute_dtype)
            scratch_shapes = []
        in_specs = [
            pl.BlockSpec((TM, TK), lambda i, k: (i, k)),
            pl.BlockSpec((TK, T_pad), lambda i, k: (k, 0)),
            pl.BlockSpec((1, T_pad), lambda i, k: (0, 0)),
        ]
        out_specs = pl.BlockSpec((TM, T_pad), lambda i, k: (i, 0))
        dim_sem = ("parallel", "arbitrary")
        est = (2 * TM * TK * bx + 2 * TK * T_pad * bw + 2 * TM * T_pad * bo
               + (TM * T_pad * 4 if use_acc else 0) + 2 * T_pad * 4)

    # Never request more VMEM than the chip physically has (v7x = 64 MiB/TC).
    vmem_limit = int(min(max(est + (4 << 20), 16 << 20), cap - (8 << 20)))

    out = pl.pallas_call(
        kernel,
        out_shape=jax.ShapeDtypeStruct((M, T_pad), out_dtype),
        grid_spec=pltpu.PrefetchScalarGridSpec(
            num_scalar_prefetch=0,
            grid=grid,
            in_specs=in_specs,
            out_specs=out_specs,
            scratch_shapes=scratch_shapes,
        ),
        compiler_params=pltpu.CompilerParams(
            dimension_semantics=dim_sem,
            vmem_limit_bytes=vmem_limit,
        ),
    )(x_flat, wt, b2)

    if T_pad != T:
        out = out[:, :T]
    return out.reshape(B, V, T)


def flatten_head_reference(x, weight, bias):
    B, V, D, P = x.shape
    x_flat = x.reshape(B, V, D * P).astype(jnp.float32)
    return jnp.einsum("bvn,tn->bvt", x_flat, weight.astype(jnp.float32)) + bias


if __name__ == "__main__":
    key = jax.random.PRNGKey(0)

    # ---- test 1: small shapes, auto (weight-resident fast path) --------------
    B, V, D, P, T = 2, 4, 8, 4, 16           # x: [2,4,8,4], M=8, nf=32
    nf = D * P
    k1, k2, k3, key = jax.random.split(key, 4)
    bound = 1.0 / (nf ** 0.5)
    x = jax.random.normal(k1, (B, V, D, P), dtype=jnp.float32)
    w = jax.random.uniform(k2, (T, nf), minval=-bound, maxval=bound, dtype=jnp.float32)
    b = jax.random.uniform(k3, (T,), minval=-bound, maxval=bound, dtype=jnp.float32)

    out = jax.block_until_ready(flatten_head(x, w, b))
    ref = flatten_head_reference(x, w, b)
    assert out.shape == (B, V, T)
    assert jnp.allclose(out, ref, atol=1e-4, rtol=1e-4), \
        float(jnp.max(jnp.abs(out - ref)))

    # ---- test 2: forced K-tiled path, TK divides nf, ragged M, f32 output ----
    B2, V2, D2, P2, T2 = 2, 7, 16, 16, 24    # M=14, nf=256
    nf2 = D2 * P2
    k1, k2, k3, key = jax.random.split(key, 4)
    x2 = jax.random.normal(k1, (B2, V2, D2, P2), dtype=jnp.float32)
    w2 = jax.random.uniform(k2, (T2, nf2), minval=-0.1, maxval=0.1, dtype=jnp.float32)
    b2 = jax.random.uniform(k3, (T2,), minval=-0.1, maxval=0.1, dtype=jnp.float32)

    out2 = jax.block_until_ready(
        flatten_head(x2, w2, b2, tk=128, weight_resident=False))
    ref2 = flatten_head_reference(x2, w2, b2)
    assert out2.shape == (B2, V2, T2)
    assert jnp.allclose(out2, ref2, atol=1e-4, rtol=1e-4), \
        float(jnp.max(jnp.abs(out2 - ref2)))

    # ---- test 3: forced K-tiled, bf16 compute + bf16 out (f32 acc scratch),
    #              nf with no 128-multiple divisor (padded-contraction fallback)
    B3, V3, D3, P3, T3 = 2, 7, 16, 12, 24    # M=14, nf=192
    nf3 = D3 * P3
    k1, k2, k3, key = jax.random.split(key, 4)
    x3 = jax.random.normal(k1, (B3, V3, D3, P3), dtype=jnp.float32)
    w3 = jax.random.uniform(k2, (T3, nf3), minval=-0.1, maxval=0.1, dtype=jnp.float32)
    b3 = jax.random.uniform(k3, (T3,), minval=-0.1, maxval=0.1, dtype=jnp.float32)

    out3 = jax.block_until_ready(
        flatten_head(x3, w3, b3, tk=128, compute_dtype=jnp.bfloat16,
                     out_dtype=jnp.bfloat16, weight_resident=False))
    ref3 = flatten_head_reference(x3, w3, b3)
    assert out3.shape == (B3, V3, T3)
    assert jnp.allclose(out3.astype(jnp.float32), ref3, atol=3e-2, rtol=3e-2), \
        float(jnp.max(jnp.abs(out3.astype(jnp.float32) - ref3)))

    print("KERNEL_OK")
</pallas_src>

<mosaic_0001>
module attributes {stable_mosaic.version = 11 : i64} {
  func.func @_fh_kernel_resident(%arg0: i32, %arg1: memref<8x32xf32, #tpu.memory_space<vmem>>, %arg2: memref<32x128xf32, #tpu.memory_space<vmem>>, %arg3: memref<1x128xf32, #tpu.memory_space<vmem>>, %arg4: memref<8x128xf32, #tpu.memory_space<vmem>>) attributes {dimension_semantics = [#tpu.dimension_semantics<parallel>], iteration_bounds = array<i64: 1>, scalar_prefetch = 0 : i64, scratch_operands = 0 : i64, tpu.core_type = #tpu.core_type<tc>, window_params = [{transform_indices = @transform_0, window_bounds = array<i64: 8, 32>}, {pipeline_mode = #tpu.pipeline_mode<synchronous>, transform_indices = @transform_1, window_bounds = array<i64: 32, 128>}, {pipeline_mode = #tpu.pipeline_mode<synchronous>, transform_indices = @transform_2, window_bounds = array<i64: 1, 128>}, {transform_indices = @transform_3, window_bounds = array<i64: 8, 128>}]} {
    %c0 = arith.constant 0 : index
    %c0_0 = arith.constant 0 : index
    %0 = vector.load %arg1[%c0, %c0_0] : memref<8x32xf32, #tpu.memory_space<vmem>>, vector<8x32xf32>
    %c0_1 = arith.constant 0 : index
    %c0_2 = arith.constant 0 : index
    %1 = vector.load %arg2[%c0_1, %c0_2] : memref<32x128xf32, #tpu.memory_space<vmem>>, vector<32x128xf32>
    %cst = arith.constant dense<0.000000e+00> : vector<8x128xf32>
    %2 = tpu.matmul %0, %1, %cst {dimension_numbers = #tpu.dot_dimension_numbers<[1], [0], [0], [1], [0, 0, 1, 1], [], []>} : vector<8x32xf32>, vector<32x128xf32>, vector<8x128xf32> -> vector<8x128xf32>
    %c0_3 = arith.constant 0 : index
    %c0_4 = arith.constant 0 : index
    %3 = vector.load %arg3[%c0_3, %c0_4] : memref<1x128xf32, #tpu.memory_space<vmem>>, vector<1x128xf32>
    %4 = vector.broadcast %3 : vector<1x128xf32> to vector<8x128xf32>
    %5 = arith.addf %2, %4 : vector<8x128xf32>
    %c0_5 = arith.constant 0 : index
    %c0_6 = arith.constant 0 : index
    %6 = vector.load %arg4[%c0_5, %c0_6] : memref<8x128xf32, #tpu.memory_space<vmem>>, vector<8x128xf32>
    tpu.vector_store %arg4[%c0_5, %c0_6], %5 {strides = array<i32>} : memref<8x128xf32, #tpu.memory_space<vmem>>, vector<8x128xf32>,
    return
  }
  func.func @transform_0(%arg0: i32) -> (i32, i32) {
    %c0_i32 = arith.constant 0 : i32
    %c0_i32_0 = arith.constant 0 : i32
    return %arg0, %c0_i32 : i32, i32
  }
  func.func @transform_1(%arg0: i32) -> (i32, i32) {
    %c0_i32 = arith.constant 0 : i32
    %c0_i32_0 = arith.constant 0 : i32
    %c0_i32_1 = arith.constant 0 : i32
    return %c0_i32, %c0_i32_0 : i32, i32
  }
  func.func @transform_2(%arg0: i32) -> (i32, i32) {
    %c0_i32 = arith.constant 0 : i32
    %c0_i32_0 = arith.constant 0 : i32
    %c0_i32_1 = arith.constant 0 : i32
    return %c0_i32, %c0_i32_0 : i32, i32
  }
  func.func @transform_3(%arg0: i32) -> (i32, i32) {
    %c0_i32 = arith.constant 0 : i32
    %c0_i32_0 = arith.constant 0 : i32
    return %arg0, %c0_i32 : i32, i32
  }
}

</mosaic_0001>

<bundles_post_ra>
// kernel: flatten_head.1
= control target key start
LH: loop header
LB: loop body
LE: loop exit
PB: predicated region body
PF: predicated region fallthrough
CT: control target
= control target key end

     0   :  { %v168_v3 = vmov 0.0|0.0   ;;  %vm169_vm0 = vmmov 0   ;;  %v170_v6 = vmov 0.0   ;;  %s222_s0 = inlined_call_operand.vmem [shape: f32[8,32], index: 0, kind: input, shape index: {}]   ;;  %s223_s1 = inlined_call_operand.vmem [shape: f32[32,128], index: 1, kind: input, shape index: {}]   ;;  %s224_s2 = inlined_call_operand.vmem [shape: f32[1,128], index: 2, kind: input, shape index: {}]   ;;  %s225_s3 = inlined_call_operand.hbm [shape: f32[8,128], index: 3, kind: output, shape index: {}]  }
   0x1   :  { %v16_v0 = vld [vmem:[%s223_s1] sm:$0xff]  ;;  %v17_v1 = vld [vmem:[%s223_s1 + $0x8] sm:$0xff]  ;;  %v18_v2 = vld [vmem:[%s223_s1 + $0x10] sm:$0xff]  ;;  %134 = vmatprep.subr.bf16.mxu0 %v168_v3  ;;  %131 = vmatprep.mubr.msk.f32.mxu0 %vm169_vm0, %v170_v6 }
   0x2   :  { %v135_v4 = vpack.c.bf16 %v17_v1, %v16_v0  ;;  %v19_v5 = vld [vmem:[%s223_s1 + $0x18] sm:$0xff] }
   0x3   :  { %8 = vsyncpa [#allocation3], 0  ;;  %v138_v7 = vpack.c.bf16 %v19_v5, %v18_v2  ;;  %v15_v8 = vld [vmem:[%s222_s0] sm:$0xff]  ;;  %vm27_vm1 = vcmask 261120   ;;  %s171_s24 = smov [#allocation2]  }
   0x4   :  { %136 = vmatpush3.bf16.msra.mxu0 %v135_v4  ;;  %v116_v9 = vld [vmem:[%s224_s2] ss:$0 sm:$0xff]  ;;  %s108_s1 = sshll.u32 %s171_s24, 4  ;;  %s109_s1 = int_to_ptr.vmem [resolvable:$true] %s108_s1 }
   0x5   :  { %137 = vmatprep.subr.bf16.mxu0 %v168_v3  ;;  %s144_s25 = scalar_lea.vmem %s109_s1, 128  ;;  %p149_p1 = scmp.lt.s32.totalorder %s109_s1, %s109_s1 }
   0x6   :  { %p145_p0 = scmp.ne.s32.totalorder %s109_s1, %s144_s25  ;;  %p150_p2 = scmp.lt.s32.totalorder %s144_s25, %s144_s25 }
   0x8   :  { %139 = vmatpush3.bf16.msra.mxu0 %v138_v7  ;;  %p151_p3 = por %p150_p2, %p149_p1 }
   0xa   :  { %p152_p4 = pnand %p151_p3, %p145_p0 }
   0xb   :  { %132 = vmatmul.mubr.msk.f32.vlgmr.msra.gmra.mrb[0].mxu0 %vm27_vm1, %v15_v8 }
  0xde   :  { %v97_v10 = vpop.f32.mrb[0].mxu0 }
  0xdf   :  { %v98_v11 = vadd.f32 %v116_v9, %v97_v10  ;;  %v133_v12 = vpop.f32.mrb[1].mxu0 }
  0xe1   :  { %101 = vst [vmem:[#allocation2] sm:$0xff] %v98_v11 }
  0xe2   :  { %155 = shalt.err (!%p152_p4)
}
  0xe3   :  { %s156_s27 = scalar_lea.hbm %s225_s3, 128 }
  0xe4   :  { %p157_p5 = scmp.ne.s32.totalorder %s225_s3, %s156_s27  ;;  %p160_p6 = scmp.lt.u32.totalorder %s156_s27, %s225_s3 }
  0xe6   :  { %p162_p7 = pnand %p160_p6, %p157_p5 }
  0xe8   :  { %165 = shalt.err (!%p162_p7)
}
  0xe9   :  { %111 = dma.vmem_to_hbm [thread:$0]  %s109_s1, 128, %s225_s3, [#allocation3]  }
  0xea   :  { %166 = dma.done.wait [#allocation3], 128  }
  0xeb   :  { %167 = vsyncadd [#allocation3], 4294967168 }
  0xec   :  { %115 = vsyncpa [#allocation3], 1 }

</bundles_post_ra>
